<compile_context>
chip_gen: v5e
topology: v5e:2x2
jax: 0.10.0
libtpu: 0.0.40
codegen_flags: <defaults>
</compile_context>

<pallas_src>
import jax
import jax.numpy as jnp
from jax import lax
from jax.experimental import pallas as pl
from jax.experimental.pallas import tpu as pltpu


# ---------------------------------------------------------------------------
# Filter operator (exact rfft -> mask -> irfft as a real T x T matrix)
# ---------------------------------------------------------------------------
def _make_filter_matrix(T, mask_spectrum):
    """Real (T, T) operator equivalent to irfft(mask * rfft(.)) along time.

    Built and kept in float32 so the masked frequency bins are zeroed exactly,
    independent of the activation dtype.
    """
    eye = jnp.eye(T, dtype=jnp.float32)
    F = jnp.fft.rfft(eye, axis=0)                       # (T//2+1, T) complex
    keep = jnp.ones((T // 2 + 1, 1), dtype=F.dtype)
    keep = keep.at[mask_spectrum, :].set(0)             # zero the masked bins
    A = jnp.fft.irfft(F * keep, n=T, axis=0)            # (T, T) real f32
    return A


# ---------------------------------------------------------------------------
# Sizing helpers (generation-aware VMEM budget, byte-based tile selection)
# ---------------------------------------------------------------------------
def _round_up(x, m):
    return ((x + m - 1) // m) * m


def _vmem_budget_bytes():
    """~75% of physical per-core VMEM: ≈48 MiB on v7x, ≈96 MiB on v5e/v6e."""
    cap = 64 << 20
    try:
        info = pltpu.get_tpu_info()
        cap = int(getattr(info, "vmem_capacity_bytes", cap))
    except Exception:
        pass
    return max(32 << 20, (cap * 3) // 4)


def _choose_tile_n(T, n_pad, itemsize, vmem_budget, a_bytes):
    """Lane tile (multiple of 128) for the (T, N) lane-major kernel.

    Sized by bytes: ~2 MiB per stream per block (amortizes the ~0.35 us
    per-grid-step overhead), capped so A + 6 double-buffered streams fit the
    VMEM budget.  Prefers an even number of grid steps (v7x dual-TC balance).
    """
    bytes_per_lane = T * itemsize
    max_lanes_vmem = max(128, (vmem_budget - a_bytes) // (6 * bytes_per_lane))
    target_lanes = max(128, (2 << 20) // bytes_per_lane)
    tile = min(n_pad, max_lanes_vmem, target_lanes)
    tile = max(128, (tile // 128) * 128)
    steps = pl.cdiv(n_pad, tile)
    if steps > 1 and steps % 2 == 1:
        tile2 = _round_up(pl.cdiv(n_pad, steps + 1), 128)
        if 128 <= tile2 <= tile:
            tile = tile2
    return tile


def _choose_native_blocks(B, T, C, itemsize, vmem_budget, a_bytes):
    """(batch_block, channel_block) for the native (B, T, C) layout kernel."""
    stream_budget = max(vmem_budget - a_bytes, 6 * 128 * T * itemsize)
    row_bytes = T * C * itemsize                       # one batch row, one stream
    if 6 * row_bytes <= stream_budget:
        cblk = C
        by_target = max(1, (2 << 20) // row_bytes)     # ~2 MiB per stream per block
        by_vmem = max(1, stream_budget // (6 * row_bytes))
        bblk = int(min(B, by_target, by_vmem))
        steps = pl.cdiv(B, bblk)
        if steps > 1 and steps % 2 == 1:               # keep both v7x TCs balanced
            bblk = int(pl.cdiv(B, steps + 1))
            bblk = max(1, bblk)
    else:
        bblk = 1
        max_c = (stream_budget // (6 * T * itemsize) // 128) * 128
        cblk = int(max(128, (min(max_c, C) // 128) * 128))
    return bblk, cblk


# ---------------------------------------------------------------------------
# Kernels
# ---------------------------------------------------------------------------
def _lane_major_kernel(a_ref, x_ref, xvar_ref, xinv_ref):
    # a_ref: (T, T) f32, grid-invariant (single-buffered, DMA'd once)
    # x_ref: (T, TILE_N) lane-dense slab of the (T, N) activations
    x = x_ref[...].astype(jnp.float32)
    x_var = jnp.dot(a_ref[...], x, preferred_element_type=jnp.float32)   # MXU
    xvar_ref[...] = x_var.astype(xvar_ref.dtype)
    xinv_ref[...] = (x - x_var).astype(xinv_ref.dtype)                   # VPU residual


def _native_kernel(a_ref, x_ref, xvar_ref, xinv_ref):
    # a_ref: (T, T) f32; x_ref: (Bblk, T, Cblk) in the model's native layout.
    # Loop over the block's batch rows; each row is one dense (T,T)@(T,Cblk)
    # MXU matmul (Cblk >= 128 so lanes are dense).  MXU/VPU have huge slack vs
    # the HBM DMA, so the short loop stays hidden.
    a = a_ref[...]

    def body(i, carry):
        xi = x_ref[i].astype(jnp.float32)                                # (T, Cblk)
        xv = jnp.dot(a, xi, preferred_element_type=jnp.float32)
        xvar_ref[i] = xv.astype(xvar_ref.dtype)
        xinv_ref[i] = (xi - xv).astype(xinv_ref.dtype)
        return carry

    nb = x_ref.shape[0]
    lax.fori_loop(0, nb, body, 0, unroll=(nb <= 8))


# ---------------------------------------------------------------------------
# Pallas wrappers
# ---------------------------------------------------------------------------
def fourier_filter_lane_major(x_tn, A):
    """Core kernel on a lane-major (T, N) activation slab (N = B*C folded).

    This is the zero-plumbing entry point: pipelines that keep activations in
    this layout across adjacent layers pay no transpose/pad at all.  Returns
    (x_var_tn, x_inv_tn) with the same (T, N) shape and dtype as `x_tn`.
    """
    T, N = x_tn.shape
    dtype = x_tn.dtype
    itemsize = jnp.dtype(dtype).itemsize
    a_f32 = A.astype(jnp.float32)
    a_bytes = T * T * 4

    n_pad = _round_up(max(N, 128), 128)
    x_in = x_tn if n_pad == N else jnp.pad(x_tn, ((0, 0), (0, n_pad - N)))

    budget = _vmem_budget_bytes()
    tile_n = _choose_tile_n(T, n_pad, itemsize, budget, a_bytes)
    steps = pl.cdiv(n_pad, tile_n)          # ragged last block handled by Pallas

    needed = a_bytes + 6 * T * tile_n * itemsize    # A + (in + 2 outs) double-buffered
    vmem_limit = int(min(budget, max(needed + (8 << 20), 32 << 20)))
    # TODO(synk): for very large T, add a K-tiling grid axis over the contraction
    # with an f32 VMEM accumulator instead of keeping the full (T, T) A resident.

    cost = pl.CostEstimate(
        flops=2 * T * T * n_pad,
        transcendentals=0,
        bytes_accessed=a_bytes + 3 * T * n_pad * itemsize,
    )

    call = pl.pallas_call(
        _lane_major_kernel,
        out_shape=(
            jax.ShapeDtypeStruct((T, n_pad), dtype),
            jax.ShapeDtypeStruct((T, n_pad), dtype),
        ),
        grid_spec=pltpu.PrefetchScalarGridSpec(
            num_scalar_prefetch=0,
            grid=(steps,),
            in_specs=[
                # Grid-invariant filter matrix: single buffer, fetched once.
                pl.BlockSpec((T, T), lambda n: (0, 0), pipeline_mode=pl.Buffered(1)),
                pl.BlockSpec((T, tile_n), lambda n: (0, n)),
            ],
            out_specs=[
                pl.BlockSpec((T, tile_n), lambda n: (0, n)),
                pl.BlockSpec((T, tile_n), lambda n: (0, n)),
            ],
        ),
        compiler_params=pltpu.CompilerParams(
            dimension_semantics=("parallel",),
            vmem_limit_bytes=vmem_limit,
        ),
        cost_estimate=cost,
    )
    xvar, xinv = call(a_f32, x_in)
    if n_pad != N:
        # NOTE: padded lanes [N:n_pad] carry garbage; keep this slice.
        xvar = xvar[:, :N]
        xinv = xinv[:, :N]
    return xvar, xinv


def _fourier_filter_native(x, A):
    """Native (B, T, C) layout path (C >= 128): no wrapper transposes or pads."""
    B, T, C = x.shape
    dtype = x.dtype
    itemsize = jnp.dtype(dtype).itemsize
    a_f32 = A.astype(jnp.float32)
    a_bytes = T * T * 4

    budget = _vmem_budget_bytes()
    bblk, cblk = _choose_native_blocks(B, T, C, itemsize, budget, a_bytes)
    grid = (pl.cdiv(B, bblk), pl.cdiv(C, cblk))

    needed = a_bytes + 6 * bblk * T * cblk * itemsize
    vmem_limit = int(min(budget, max(needed + (8 << 20), 32 << 20)))

    cost = pl.CostEstimate(
        flops=2 * B * C * T * T,
        transcendentals=0,
        bytes_accessed=a_bytes + 3 * B * T * C * itemsize,
    )

    call = pl.pallas_call(
        _native_kernel,
        out_shape=(
            jax.ShapeDtypeStruct((B, T, C), dtype),
            jax.ShapeDtypeStruct((B, T, C), dtype),
        ),
        grid_spec=pltpu.PrefetchScalarGridSpec(
            num_scalar_prefetch=0,
            grid=grid,
            in_specs=[
                pl.BlockSpec((T, T), lambda b, c: (0, 0), pipeline_mode=pl.Buffered(1)),
                pl.BlockSpec((bblk, T, cblk), lambda b, c: (b, 0, c)),
            ],
            out_specs=[
                pl.BlockSpec((bblk, T, cblk), lambda b, c: (b, 0, c)),
                pl.BlockSpec((bblk, T, cblk), lambda b, c: (b, 0, c)),
            ],
        ),
        compiler_params=pltpu.CompilerParams(
            dimension_semantics=("parallel", "parallel"),
            vmem_limit_bytes=vmem_limit,
        ),
        cost_estimate=cost,
    )
    return call(a_f32, x)


def _fourier_filter_folded(x, A):
    """Small-C path: fold B into the lane axis ((T, B*C) lane-dense slab).

    With C < 128 lanes a native-layout kernel would waste ~128/C of every DMA,
    VMEM tile and vector store, so the lane-dense fold is the right layout; the
    transposes below are the price of doing it per call.
    """
    B, T, C = x.shape
    N = B * C
    # TODO(synk): in a layout-persistent pipeline keep activations in the (T, B*C)
    # layout across adjacent Koopa layers and call fourier_filter_lane_major
    # directly -- these transposes then disappear (they dominate HBM traffic here).
    x_tn = jnp.transpose(x, (1, 0, 2)).reshape(T, N)
    xvar_tn, xinv_tn = fourier_filter_lane_major(x_tn, A)
    x_var = jnp.transpose(xvar_tn.reshape(T, B, C), (1, 0, 2))
    x_inv = jnp.transpose(xinv_tn.reshape(T, B, C), (1, 0, 2))
    return x_var, x_inv


def fourier_filter(x, mask_spectrum):
    """x: (B, T, C) float array. Returns (x_var, x_inv), both (B, T, C)."""
    B, T, C = x.shape
    assert T % 2 == 0, "irfft default output length equals T only for even T (as in the module)"
    # NOTE: best layouts when T is a multiple of 8 (f32) / 16 (bf16); other T
    # still works (block == full dim) with some sublane padding.
    A = _make_filter_matrix(T, mask_spectrum)        # f32, exact spectral zeroing
    if C >= 128:
        return _fourier_filter_native(x, A)          # zero wrapper plumbing
    return _fourier_filter_folded(x, A)


# ---------------------------------------------------------------------------
# Reference + self-test
# ---------------------------------------------------------------------------
def _reference(x, mask_spectrum):
    xf = jnp.fft.rfft(x, axis=1)
    mask = jnp.ones_like(xf).at[:, mask_spectrum, :].set(0)
    x_var = jnp.fft.irfft(xf * mask, axis=1)         # default n == T for even T
    x_inv = x - x_var
    return x_var.astype(x.dtype), x_inv.astype(x.dtype)


if __name__ == "__main__":
    key = jax.random.PRNGKey(0)
    k1, k2 = jax.random.split(key)

    # Case 1: small channel count -> lane-dense folded (T, B*C) path.
    B, T, C = 2, 16, 8
    x = jax.random.normal(k1, (B, T, C), dtype=jnp.float32)
    mask_spectrum = jnp.array([0, 2, 5], dtype=jnp.int32)
    x_var, x_inv = fourier_filter(x, mask_spectrum)
    jax.block_until_ready((x_var, x_inv))
    ref_var, ref_inv = _reference(x, mask_spectrum)
    assert jnp.allclose(x_var, ref_var, atol=1e-4, rtol=1e-4)
    assert jnp.allclose(x_inv, ref_inv, atol=1e-4, rtol=1e-4)
    assert jnp.allclose(x_var + x_inv, x, atol=1e-5, rtol=1e-5)

    # Case 2: lane-dense channel count -> native (B, T, C) path (no wrapper ops).
    B2, T2, C2 = 2, 16, 128
    x2 = jax.random.normal(k2, (B2, T2, C2), dtype=jnp.float32)
    mask2 = jnp.array([0, 3], dtype=jnp.int32)
    v2, i2 = fourier_filter(x2, mask2)
    jax.block_until_ready((v2, i2))
    rv2, ri2 = _reference(x2, mask2)
    assert jnp.allclose(v2, rv2, atol=1e-4, rtol=1e-4)
    assert jnp.allclose(i2, ri2, atol=1e-4, rtol=1e-4)
    assert jnp.allclose(v2 + i2, x2, atol=1e-5, rtol=1e-5)

    print("KERNEL_OK")
</pallas_src>

<mosaic_0001>
module attributes {stable_mosaic.version = 11 : i64} {
  func.func @_lane_major_kernel(%arg0: i32, %arg1: memref<16x16xf32, #tpu.memory_space<vmem>>, %arg2: memref<16x128xf32, #tpu.memory_space<vmem>>, %arg3: memref<16x128xf32, #tpu.memory_space<vmem>>, %arg4: memref<16x128xf32, #tpu.memory_space<vmem>>) attributes {dimension_semantics = [#tpu.dimension_semantics<parallel>], iteration_bounds = array<i64: 1>, scalar_prefetch = 0 : i64, scratch_operands = 0 : i64, tpu.core_type = #tpu.core_type<tc>, window_params = [{pipeline_mode = #tpu.pipeline_mode<synchronous>, transform_indices = @transform_0, window_bounds = array<i64: 16, 16>}, {transform_indices = @transform_1, window_bounds = array<i64: 16, 128>}, {transform_indices = @transform_2, window_bounds = array<i64: 16, 128>}, {transform_indices = @transform_3, window_bounds = array<i64: 16, 128>}]} {
    %c0 = arith.constant 0 : index
    %c0_0 = arith.constant 0 : index
    %0 = vector.load %arg2[%c0, %c0_0] : memref<16x128xf32, #tpu.memory_space<vmem>>, vector<16x128xf32>
    %c0_1 = arith.constant 0 : index
    %c0_2 = arith.constant 0 : index
    %1 = vector.load %arg1[%c0_1, %c0_2] : memref<16x16xf32, #tpu.memory_space<vmem>>, vector<16x16xf32>
    %cst = arith.constant dense<0.000000e+00> : vector<16x128xf32>
    %2 = tpu.matmul %1, %0, %cst {dimension_numbers = #tpu.dot_dimension_numbers<[1], [0], [0], [1], [0, 0, 1, 1], [], []>} : vector<16x16xf32>, vector<16x128xf32>, vector<16x128xf32> -> vector<16x128xf32>
    %c0_3 = arith.constant 0 : index
    %c0_4 = arith.constant 0 : index
    %3 = vector.load %arg3[%c0_3, %c0_4] : memref<16x128xf32, #tpu.memory_space<vmem>>, vector<16x128xf32>
    tpu.vector_store %arg3[%c0_3, %c0_4], %2 {strides = array<i32>} : memref<16x128xf32, #tpu.memory_space<vmem>>, vector<16x128xf32>,
    %4 = arith.subf %0, %2 : vector<16x128xf32>
    %c0_5 = arith.constant 0 : index
    %c0_6 = arith.constant 0 : index
    %5 = vector.load %arg4[%c0_5, %c0_6] : memref<16x128xf32, #tpu.memory_space<vmem>>, vector<16x128xf32>
    tpu.vector_store %arg4[%c0_5, %c0_6], %4 {strides = array<i32>} : memref<16x128xf32, #tpu.memory_space<vmem>>, vector<16x128xf32>,
    return
  }
  func.func @transform_0(%arg0: i32) -> (i32, i32) {
    %c0_i32 = arith.constant 0 : i32
    %c0_i32_0 = arith.constant 0 : i32
    %c0_i32_1 = arith.constant 0 : i32
    return %c0_i32, %c0_i32_0 : i32, i32
  }
  func.func @transform_1(%arg0: i32) -> (i32, i32) {
    %c0_i32 = arith.constant 0 : i32
    %c0_i32_0 = arith.constant 0 : i32
    return %c0_i32, %arg0 : i32, i32
  }
  func.func @transform_2(%arg0: i32) -> (i32, i32) {
    %c0_i32 = arith.constant 0 : i32
    %c0_i32_0 = arith.constant 0 : i32
    return %c0_i32, %arg0 : i32, i32
  }
  func.func @transform_3(%arg0: i32) -> (i32, i32) {
    %c0_i32 = arith.constant 0 : i32
    %c0_i32_0 = arith.constant 0 : i32
    return %c0_i32, %arg0 : i32, i32
  }
}

</mosaic_0001>

<bundles_post_ra>
// kernel: tpu_custom_call.1
= control target key start
LH: loop header
LB: loop body
LE: loop exit
PB: predicated region body
PF: predicated region fallthrough
CT: control target
= control target key end

     0   :  { %9 = vsyncpa [#allocation3], 0  ;;  %s289_s0 = inlined_call_operand.hbm [shape: f32[16,16], index: 0, kind: input, shape index: {}]   ;;  %s290_s1 = inlined_call_operand.hbm [shape: f32[16,128], index: 1, kind: input, shape index: {}]   ;;  %s291_s2 = inlined_call_operand.hbm [shape: f32[16,128], index: 2, kind: output, shape index: {0}]   ;;  %s292_s3 = inlined_call_operand.hbm [shape: f32[16,128], index: 3, kind: output, shape index: {1}]  }
   0x1   :  { %10 = vsyncpa [#allocation6], 0 }
   0x2   :  { %11 = vsyncpa [#allocation4], 0 }
   0x3   :  { %12 = vsyncpa [#allocation9], 0  ;;  %s17_s14 = sshll.u32 %s289_s0, 4  ;;  %s239_s15 = smov [#allocation2]   ;;  %s18_s14 = int_to_ptr.hbm [resolvable:$true] %s17_s14 }
   0x4   :  { %s19_s16 = sshll.u32 %s239_s15, 4  ;;  %s30_s19 = sshll.u32 %s290_s1, 4  ;;  %s20_s16 = int_to_ptr.vmem [resolvable:$true] %s19_s16  ;;  %s31_s19 = int_to_ptr.hbm [resolvable:$true] %s30_s19 }
   0x5   :  { %s240_s20 = smov 128   ;;  %s241_s21 = smov 8  }
   0x6   :  { %25 = dma.hbm_to_vmem [thread:$0]  %s18_s14, 256, %s20_s16, [#allocation3], %s240_s20, %s240_s20, %s241_s21  }
   0x7   :  { %s242_s22 = smov [#allocation5]  }
   0x8   :  { %s32_s23 = sshll.u32 %s242_s22, 4  ;;  %s33_s23 = int_to_ptr.vmem [resolvable:$true] %s32_s23 }
   0x9   :  { %38 = dma.hbm_to_vmem [thread:$0]  %s31_s19, 256, %s33_s23, [#allocation6], %s240_s20, %s240_s20, %s241_s21  }
   0xa   :  { %231 = dma.done.wait [#allocation3], 256  }
   0xb   :  { %232 = vsyncadd [#allocation3], 4294967040 }
   0xc   :  { %233 = dma.done.wait [#allocation6], 256  }
   0xd   :  { %234 = vsyncadd [#allocation6], 4294967040  ;;  %v48_v0 = vld [vmem:[#allocation5 + $0x8] sm:$0xff]  ;;  %v47_v1 = vld [vmem:[#allocation5] sm:$0xff]  ;;  %vm51_vm0 = vcmask 130048   ;;  %s243_s0 = smov [#allocation7]  }
   0xe   :  { %72 = vmatpush.msra.mxu0 %v48_v0  ;;  %127 = vmatpush.msra.mxu1 %v48_v0  ;;  %v49_v2 = vld [vmem:[#allocation2] sm:$0xff]  ;;  %v50_v3 = vld [vmem:[#allocation2 + $0x8] sm:$0xff]  ;;  %s91_s1 = sshll.u32 %s243_s0, 4  ;;  %s93_s26 = sshll.u32 %s291_s2, 4  ;;  %s92_s1 = int_to_ptr.vmem [resolvable:$true] %s91_s1  ;;  %s94_s26 = int_to_ptr.hbm [resolvable:$true] %s93_s26 }
   0xf   :  { %s244_s27 = smov [#allocation8]   ;;  %s106_s4 = sshll.u32 %s292_s3, 4  ;;  %s107_s4 = int_to_ptr.hbm [resolvable:$true] %s106_s4 }
  0x10   :  { %73 = vmatpush.msra.mxu0 %v47_v1  ;;  %128 = vmatpush.msra.mxu1 %v47_v1  ;;  %s104_s28 = sshll.u32 %s244_s27, 4  ;;  %s105_s28 = int_to_ptr.vmem [resolvable:$true] %s104_s28 }
  0x11   :  { %125 = vmatmul.msk.f32.vlgmr.msra.gmra.mxu0 %vm51_vm0, %v49_v2  ;;  %126 = vmatmul.msk.f32.vlgmr.msra.gmra.mxu1 %vm51_vm0, %v50_v3 }
  0x8e   :  { %v75_v4 = vpop.f32.mrf.mxu0  ;;  %v78_v5 = vpop.f32.mrf.mxu1 }
  0x8f   :  { %81 = vst [vmem:[#allocation7] sm:$0xff] %v75_v4  ;;  %v83_v6 = vsub.f32 %v47_v1, %v75_v4  ;;  %v84_v7 = vsub.f32 %v48_v0, %v78_v5 }
  0x90   :  { %82 = vst [vmem:[#allocation7 + $0x8] sm:$0xff] %v78_v5 }
  0x91   :  { %85 = vst [vmem:[#allocation8] sm:$0xff] %v83_v6  ;;  %99 = dma.vmem_to_hbm [thread:$0]  %s92_s1, 256, %s94_s26, [#allocation4], %s240_s20, %s240_s20, %s241_s21  }
  0x92   :  { %86 = vst [vmem:[#allocation8 + $0x8] sm:$0xff] %v84_v7 }
  0x93   :  { %112 = dma.vmem_to_hbm [thread:$0]  %s105_s28, 256, %s107_s4, [#allocation9], %s240_s20, %s240_s20, %s241_s21  }
  0x94   :  { %235 = dma.done.wait [#allocation4], 256  }
  0x95   :  { %236 = vsyncadd [#allocation4], 4294967040 }
  0x96   :  { %237 = dma.done.wait [#allocation9], 256  }
  0x97   :  { %238 = vsyncadd [#allocation9], 4294967040 }
  0x98   :  { %121 = vsyncpa [#allocation3], 1 }
  0x99   :  { %122 = vsyncpa [#allocation6], 1 }
  0x9a   :  { %123 = vsyncpa [#allocation4], 1 }
  0x9b   :  { %124 = vsyncpa [#allocation9], 1 }

</bundles_post_ra>
